<compile_context>
chip_gen: v5e
topology: v5e:2x2
jax: 0.10.0
libtpu: 0.0.40
codegen_flags: <defaults>
</compile_context>

<pallas_src>
import functools

import numpy as np
import jax
import jax.numpy as jnp
from jax.experimental import pallas as pl
from jax.experimental.pallas import tpu as pltpu


def _cdiv(a, b):
    return -(-a // b)


def _round_up(x, m):
    return _cdiv(x, m) * m


def _tpu_traits():
    """(mxu_contraction_depth, tensorcores_per_device) — perf-only heuristic."""
    try:
        kind = jax.devices()[0].device_kind.lower()
    except Exception:
        return 128, 1
    if "v7" in kind:
        return 256, 2                  # 2x256x256 MXU, 2 TensorCores per chip
    if "v6" in kind:
        return 256, 1                  # 2x256x256 MXU, 1 TensorCore
    if "v5p" in kind or kind.strip() in ("tpu v5", "tpu v5p"):
        return 128, 2                  # v5p megacore
    if "v4" in kind:
        return 128, 2
    return 128, 1                      # v5e / unknown: conservative


# ----------------------------- Pallas kernel -------------------------------

def _proj_kernel(x_ref, w_ref, b_ref, o_ref):
    # x_ref: (tm, R*K) compute dtype; w_ref: (R*K, R*E) compute dtype (block-diag);
    # b_ref: (1, R*E) f32; o_ref: (tm, R*E) out dtype (f32 accumulate, cast on store).
    acc = jnp.dot(x_ref[...], w_ref[...], preferred_element_type=jnp.float32)
    o_ref[...] = (acc + b_ref[...]).astype(o_ref.dtype)


def patch_proj_matmul(x_col, w_mat, bias, *, compute_dtype=jnp.bfloat16,
                      out_dtype=jnp.bfloat16):
    """(M, K) @ (K, E) + bias, lane-densified via a block-diagonal repack.

    Groups R consecutive rows into one (R*K)-lane row (when K divides the MXU
    contraction depth) so loads, the MXU contraction and the stores are lane-dense.
    """
    M, K = x_col.shape
    E = w_mat.shape[1]
    mxu_depth, num_tc = _tpu_traits()

    R = 1
    if K <= mxu_depth and mxu_depth % K == 0:
        R = min(16, mxu_depth // K)

    Mr = _round_up(M, R)
    if Mr != M:                         # tiny (<R rows); fast path never hits this
        x_col = jnp.pad(x_col, ((0, Mr - M), (0, 0)))
    rows = Mr // R
    RK, RE = R * K, R * E

    xb = x_col.reshape(rows, RK).astype(compute_dtype)
    # Block-diagonal weight: R copies of (K, E) on the diagonal -> (R*K, R*E).
    # TODO(synk): w_bd / b_t (<= 256 KiB) could be packed once outside the per-call
    # jit when the module is applied repeatedly with fixed weights.
    w_bd = jnp.kron(jnp.eye(R, dtype=w_mat.dtype), w_mat).astype(compute_dtype)
    b_t = jnp.tile(bias.astype(jnp.float32), R).reshape(1, RE)

    in_b = jnp.dtype(compute_dtype).itemsize
    out_b = jnp.dtype(out_dtype).itemsize
    bytes_per_row = RK * in_b + RE * out_b
    vmem_budget = 12 * 1024 * 1024      # double-buffered working-set target (safe on
    tm_cap = max(16, (vmem_budget // (2 * bytes_per_row)) // 16 * 16)  # v5e/v6e/v7x)
    # Single-TC chips: one grid step when it fits (per-step overhead is pure loss).
    # Dual-TC chips: >= num_tc balanced steps so the "parallel" axis shards.
    tm_target = _round_up(_cdiv(rows, num_tc), 16)
    tm = max(16, min(4096, tm_cap, tm_target))
    grid = (_cdiv(rows, tm),)           # boundary block is masked by Pallas

    out = pl.pallas_call(
        _proj_kernel,
        out_shape=jax.ShapeDtypeStruct((rows, RE), out_dtype),
        grid=grid,
        in_specs=[
            pl.BlockSpec((tm, RK), lambda i: (i, 0)),
            # Weight / bias: tiny constants, same block every step -> stay resident.
            pl.BlockSpec((RK, RE), lambda i: (0, 0)),
            pl.BlockSpec((1, RE), lambda i: (0, 0)),
        ],
        out_specs=pl.BlockSpec((tm, RE), lambda i: (i, 0)),
        compiler_params=pltpu.CompilerParams(
            dimension_semantics=("parallel",),
            vmem_limit_bytes=32 * 1024 * 1024),
    )(xb, w_bd, b_t)

    y = out.reshape(Mr, E)
    return y[:M] if Mr != M else y


# --------------------------- forward (JAX glue) -----------------------------

@functools.partial(jax.jit, static_argnames=("window_size", "stride",
                                              "compute_dtype", "out_dtype"))
def patch_embedding2_forward(x, weight, bias, *, window_size, stride,
                             compute_dtype=jnp.bfloat16, out_dtype=jnp.bfloat16):
    B, C, H, W = x.shape
    E, Cw, ph, pw = weight.shape
    assert Cw == C
    K = C * ph * pw
    w_mat = weight.reshape(E, K).T          # (K, E), columns ordered (c, kh, kw)

    pad_h = (window_size - H % stride) % window_size
    pad_w = (window_size - W % stride) % window_size
    Hp, Wp = H + pad_h, W + pad_w
    xp = x.astype(compute_dtype)            # cast first: padded/repacked data in bf16
    if pad_h or pad_w:
        xp = jnp.pad(xp, ((0, 0), (0, 0), (0, pad_h), (0, pad_w)))

    ghc, gwc = window_size // ph, window_size // pw
    G = ghc * gwc
    wi_list = list(range(0, Hp - window_size + 1, stride))
    wj_list = list(range(0, Wp - window_size + 1, stride))
    num_win = len(wi_list) * len(wj_list)

    fast = (window_size % ph == 0 and window_size % pw == 0
            and stride % ph == 0 and stride % pw == 0)

    if fast:
        # Every window cell IS a patch of the global padded image: project each
        # global patch exactly once, then gather per-window rows with one static
        # jnp.take in the (bf16) output dtype.
        GH, GW = Hp // ph, Wp // pw
        GW8 = _round_up(GW, 8)              # keeps the flat im2col repack lane-dense
        xg = xp[:, :, :GH * ph, :GW * pw]
        if GW8 != GW:
            xg = jnp.pad(xg, ((0, 0), (0, 0), (0, 0), (0, (GW8 - GW) * pw)))
        xg = xg.reshape(B, C, GH, ph, GW8, pw).transpose(0, 2, 4, 1, 3, 5)
        x_col = xg.reshape(B * GH * GW8, K)                 # (c, kh, kw) ordering
        y = patch_proj_matmul(x_col, w_mat, bias,
                              compute_dtype=compute_dtype, out_dtype=out_dtype)
        # Static gather indices, row order (window, batch, ghc, gwc) to match the
        # module's window-major concat along the batch dim.
        win_gi = np.repeat(np.array([i // ph for i in wi_list]), len(wj_list))
        win_gj = np.tile(np.array([j // pw for j in wj_list]), len(wi_list))
        idx = (np.arange(B)[None, :, None, None] * (GH * GW8)
               + (win_gi[:, None, None, None]
                  + np.arange(ghc)[None, None, :, None]) * GW8
               + (win_gj[:, None, None, None]
                  + np.arange(gwc)[None, None, None, :]))
        idx = jnp.asarray(idx.reshape(-1), dtype=jnp.int32)
        out = jnp.take(y, idx, axis=0).reshape(B, num_win * G, E)
    else:
        # General fallback: materialize the windows and run im2col per window,
        # mirroring the module's _extract_patches + Conv2d.
        # TODO(synk): with many overlapping windows this duplicates HBM reads
        # num_win x; a scalar-prefetch-driven in-kernel window gather would read
        # each byte roughly once.
        wins = [xp[:, :, i:i + window_size, j:j + window_size]
                for i in wi_list for j in wj_list]
        patches = jnp.concatenate(wins, axis=0)             # (num_win*B, C, ws, ws)
        N = patches.shape[0]
        pr = patches[:, :, :ghc * ph, :gwc * pw]
        xr = pr.reshape(N, C, ghc, ph, gwc, pw).transpose(0, 2, 4, 1, 3, 5)
        x_col = xr.reshape(N * G, K)
        y = patch_proj_matmul(x_col, w_mat, bias,
                              compute_dtype=compute_dtype, out_dtype=out_dtype)
        # Flat row order is already (window, batch, gh, gw).
        out = y.reshape(B, num_win * G, E)

    # PyTorch does .view(B, num_win, G, -1).view(B, -1, E) on the transposed tensor.
    # TODO(synk): the eager PyTorch `.view` is stride-incompatible here (would raise);
    # reshape reproduces the intended (B, num_win*G, E) layout of the same flat data.
    return out, (H, W, pad_h, pad_w)


# ------------------------------ reference -----------------------------------

def reference_forward(x, weight, bias, *, window_size, stride,
                      compute_dtype=jnp.float32):
    """Direct transliteration of the module: window concat -> Conv2d -> reshapes."""
    B, C, H, W = x.shape
    pad_h = (window_size - H % stride) % window_size
    pad_w = (window_size - W % stride) % window_size
    xp = x
    if pad_h or pad_w:
        xp = jnp.pad(xp, ((0, 0), (0, 0), (0, pad_h), (0, pad_w)))
    wins = [xp[:, :, i:i + window_size, j:j + window_size]
            for i in range(0, H + pad_h - window_size + 1, stride)
            for j in range(0, W + pad_w - window_size + 1, stride)]
    patches = jnp.concatenate(wins, axis=0)
    E, _, ph, pw = weight.shape
    y = jax.lax.conv_general_dilated(
        patches.astype(compute_dtype), weight.astype(compute_dtype),
        window_strides=(ph, pw), padding="VALID",
        dimension_numbers=("NCHW", "OIHW", "NCHW"),
        preferred_element_type=jnp.float32)
    y = y + bias[None, :, None, None].astype(jnp.float32)
    N, _, gh, gw = y.shape
    y = y.reshape(N, E, gh * gw).transpose(0, 2, 1)          # flatten(2).transpose(1,2)
    out = y.reshape(B, -1, E)
    return out, (H, W, pad_h, pad_w)


# -------------------------------- main ---------------------------------------

if __name__ == "__main__":
    key = jax.random.PRNGKey(0)
    kx, kw1, kb1, kw2, kb2 = jax.random.split(key, 5)

    # ---- config 1: window_size=64, stride=32, embed_dim=32  (fast / shared path) ----
    window_size, stride, embed_dim = 64, 32, 32
    B, C, H, W = 2, 4, 96, 96
    ph = pw = max(1, window_size // 32)      # patch_size as computed in forward()

    x = jax.random.normal(kx, (B, C, H, W), dtype=jnp.float32)
    fan_out = embed_dim * ph * pw            # kaiming-normal fan_out style
    weight = jax.random.normal(kw1, (embed_dim, C, ph, pw), jnp.float32) * \
        jnp.sqrt(2.0 / fan_out)
    bias = 0.1 * jax.random.normal(kb1, (embed_dim,), jnp.float32)

    out, orig = patch_embedding2_forward(
        x, weight, bias, window_size=window_size, stride=stride,
        compute_dtype=jnp.bfloat16, out_dtype=jnp.bfloat16)
    out = jax.block_until_ready(out)
    out_f = out.astype(jnp.float32)

    ref_bf16, _ = reference_forward(x, weight, bias, window_size=window_size,
                                    stride=stride, compute_dtype=jnp.bfloat16)
    ref_f32, _ = reference_forward(x, weight, bias, window_size=window_size,
                                   stride=stride, compute_dtype=jnp.float32)
    assert out.shape == ref_f32.shape, (out.shape, ref_f32.shape)
    assert tuple(int(v) for v in orig) == (H, W, 0, 0)
    # Same bf16-rounded inputs, f32 accumulation; our output is bf16-rounded on store.
    assert jnp.allclose(out_f, ref_bf16, atol=3e-2, rtol=3e-2), \
        float(jnp.max(jnp.abs(out_f - ref_bf16)))
    # Against the full-f32 module semantics -> within bf16 rounding of inputs+output.
    assert jnp.allclose(out_f, ref_f32, atol=1e-1, rtol=1e-1), \
        float(jnp.max(jnp.abs(out_f - ref_f32)))

    # ---- config 2: window_size=96 -> patch_size=3, stride=32 (general fallback) ----
    ws2, st2, e2 = 96, 32, 32
    ph2 = pw2 = max(1, ws2 // 32)            # 3; stride % 3 != 0 -> fallback path
    weight2 = jax.random.normal(kw2, (e2, C, ph2, pw2), jnp.float32) * \
        jnp.sqrt(2.0 / (e2 * ph2 * pw2))
    bias2 = 0.1 * jax.random.normal(kb2, (e2,), jnp.float32)

    out2, _ = patch_embedding2_forward(
        x, weight2, bias2, window_size=ws2, stride=st2,
        compute_dtype=jnp.bfloat16, out_dtype=jnp.bfloat16)
    out2 = jax.block_until_ready(out2)
    out2_f = out2.astype(jnp.float32)
    ref2, _ = reference_forward(x, weight2, bias2, window_size=ws2, stride=st2,
                                compute_dtype=jnp.bfloat16)
    assert out2.shape == ref2.shape, (out2.shape, ref2.shape)
    assert jnp.allclose(out2_f, ref2, atol=3e-2, rtol=3e-2), \
        float(jnp.max(jnp.abs(out2_f - ref2)))

    print("KERNEL_OK")
</pallas_src>

<mosaic_0001>
module attributes {stable_mosaic.version = 11 : i64} {
  func.func @_proj_kernel(%arg0: i32, %arg1: memref<576x128xbf16, #tpu.memory_space<vmem>>, %arg2: memref<128x256xbf16, #tpu.memory_space<vmem>>, %arg3: memref<1x256xf32, #tpu.memory_space<vmem>>, %arg4: memref<576x256xbf16, #tpu.memory_space<vmem>>) attributes {dimension_semantics = [#tpu.dimension_semantics<parallel>], iteration_bounds = array<i64: 1>, scalar_prefetch = 0 : i64, scratch_operands = 0 : i64, tpu.core_type = #tpu.core_type<tc>, window_params = [{transform_indices = @transform_0, window_bounds = array<i64: 576, 128>}, {pipeline_mode = #tpu.pipeline_mode<synchronous>, transform_indices = @transform_1, window_bounds = array<i64: 128, 256>}, {pipeline_mode = #tpu.pipeline_mode<synchronous>, transform_indices = @transform_2, window_bounds = array<i64: 1, 256>}, {transform_indices = @transform_3, window_bounds = array<i64: 576, 256>}]} {
    %c0 = arith.constant 0 : index
    %c0_0 = arith.constant 0 : index
    %0 = vector.load %arg1[%c0, %c0_0] : memref<576x128xbf16, #tpu.memory_space<vmem>>, vector<576x128xbf16>
    %c0_1 = arith.constant 0 : index
    %c0_2 = arith.constant 0 : index
    %1 = vector.load %arg2[%c0_1, %c0_2] : memref<128x256xbf16, #tpu.memory_space<vmem>>, vector<128x256xbf16>
    %cst = arith.constant dense<0.000000e+00> : vector<576x256xf32>
    %2 = tpu.matmul %0, %1, %cst {dimension_numbers = #tpu.dot_dimension_numbers<[1], [0], [0], [1], [0, 0, 1, 1], [], []>} : vector<576x128xbf16>, vector<128x256xbf16>, vector<576x256xf32> -> vector<576x256xf32>
    %c0_3 = arith.constant 0 : index
    %c0_4 = arith.constant 0 : index
    %3 = vector.load %arg3[%c0_3, %c0_4] : memref<1x256xf32, #tpu.memory_space<vmem>>, vector<1x256xf32>
    %4 = vector.broadcast %3 : vector<1x256xf32> to vector<576x256xf32>
    %5 = arith.addf %2, %4 : vector<576x256xf32>
    %6 = arith.truncf %5 : vector<576x256xf32> to vector<576x256xbf16>
    %c0_5 = arith.constant 0 : index
    %c0_6 = arith.constant 0 : index
    %7 = vector.load %arg4[%c0_5, %c0_6] : memref<576x256xbf16, #tpu.memory_space<vmem>>, vector<576x256xbf16>
    tpu.vector_store %arg4[%c0_5, %c0_6], %6 {strides = array<i32>} : memref<576x256xbf16, #tpu.memory_space<vmem>>, vector<576x256xbf16>,
    return
  }
  func.func @transform_0(%arg0: i32) -> (i32, i32) {
    %c0_i32 = arith.constant 0 : i32
    %c0_i32_0 = arith.constant 0 : i32
    return %arg0, %c0_i32 : i32, i32
  }
  func.func @transform_1(%arg0: i32) -> (i32, i32) {
    %c0_i32 = arith.constant 0 : i32
    %c0_i32_0 = arith.constant 0 : i32
    %c0_i32_1 = arith.constant 0 : i32
    return %c0_i32, %c0_i32_0 : i32, i32
  }
  func.func @transform_2(%arg0: i32) -> (i32, i32) {
    %c0_i32 = arith.constant 0 : i32
    %c0_i32_0 = arith.constant 0 : i32
    %c0_i32_1 = arith.constant 0 : i32
    return %c0_i32, %c0_i32_0 : i32, i32
  }
  func.func @transform_3(%arg0: i32) -> (i32, i32) {
    %c0_i32 = arith.constant 0 : i32
    %c0_i32_0 = arith.constant 0 : i32
    return %arg0, %c0_i32 : i32, i32
  }
}

</mosaic_0001>

<bundles_post_ra>
// kernel: tile.8
= control target key start
LH: loop header
LB: loop body
LE: loop exit
PB: predicated region body
PF: predicated region fallthrough
CT: control target
= control target key end

     0   :  { %s22_s0 = inlined_call_operand.vmem [shape: f32[32], index: 0, kind: input, shape index: {}]   ;;  %s23_s1 = inlined_call_operand.vmem [shape: f32[8,32], index: 1, kind: output, shape index: {}]  }
   0x1   :  { %v4_v0 = vld [vmem:[%s22_s0] ss:$0 sm:$0xff] }
   0x2   :  { %5 = vst [vmem:[%s23_s1] sm:$0xff] %v4_v0 }

// kernel: tile.9
= control target key start
LH: loop header
LB: loop body
LE: loop exit
PB: predicated region body
PF: predicated region fallthrough
CT: control target
= control target key end

     0   :  { %s7_s6 = smov 3  ;;  %s46_s9 = smov 96   ;;  %vm4_vm0 = vcmask 261120   ;;  %vm11_vm1 = vcmask 1048320   ;;  %vm18_vm2 = vcmask 785920   ;;  %vm25_vm3 = vcmask 523520   ;;  %s77_s0 = inlined_call_operand.vmem [shape: f32[8,32], index: 0, kind: input, shape index: {}]   ;;  %s78_s1 = inlined_call_operand.vmem [shape: f32[1,256], index: 1, kind: output, shape index: {}]  }
   0x1   :  { %v39_v0 = vld [vmem:[%s77_s0 + $0x3] ss:$4 sm:%s7_s6]   ;;  %s21_s10 = smov 3  ;;  %s14_s13 = smov 3 }
   0x2   :  { %9 = vrot.lane.b32.xlu0 %v39_v0, %s46_s9  ;;  %v41_v1 = vld [vmem:[%s77_s0 + $0x1] ss:$4 sm:%s21_s10]   ;;  %s47_s14 = smov 32   ;;  %s48_s17 = smov 64  }
   0x3   :  { %23 = vrot.lane.b32.xlu1 %v41_v1, %s47_s14  ;;  %v40_v2 = vld [vmem:[%s77_s0 + $0x2] ss:$4 sm:%s14_s13]   ;;  %s2_s18 = smov 3 }
   0x4   :  { %v3_v3 = vld [vmem:[%s77_s0] ss:$4 sm:%s2_s18]  }
   0x5   :  { %5 = vst.msk [vmem:[#allocation0] ss:$8 sm:$0x3] %vm4_vm0, %v3_v3  }
   0xa   :  { %16 = vrot.lane.b32.xlu0 %v40_v2, %s48_s17 }
  0x74   :  { %v10_v4 = vpop.permute.xlu0 %9  }
  0x75   :  { %12 = vst.msk [vmem:[#allocation0] ss:$8 sm:$0x3] %vm11_vm1, %v10_v4   ;;  %v24_v5 = vpop.permute.xlu1 %23  }
  0x7c   :  { %v17_v6 = vpop.permute.xlu0 %16  }
  0x7d   :  { %19 = vst.msk [vmem:[#allocation0] ss:$8 sm:$0x3] %vm18_vm2, %v17_v6  }
  0x7e   :  { %26 = vst.msk [vmem:[#allocation0] ss:$8 sm:$0x3] %vm25_vm3, %v24_v5  }
  0x85   :  { %v29_v7 = vld [vmem:[#allocation0] sm:$0x1]  ;;  %v34_v8 = vld [vmem:[#allocation0 + $0x8] sm:$0x1] }
  0x86   :  { %32 = vst [vmem:[%s78_s1] sm:$0x1] %v29_v7 }
  0x87   :  { %42 = vst [vmem:[%s78_s1 + $0x1] sm:$0x1] %v34_v8 }

// kernel: patch_embedding2_forward.1
= control target key start
LH: loop header
LB: loop body
LE: loop exit
PB: predicated region body
PF: predicated region fallthrough
CT: control target
= control target key end

     0   :  { %s1797_s1 = inlined_call_operand.vmem [shape: bf16[128,256], index: 1, kind: input, shape index: {}]   ;;  %s1798_s0 = inlined_call_operand.vmem [shape: bf16[576,128], index: 0, kind: input, shape index: {}]   ;;  %s1799_s2 = inlined_call_operand.vmem [shape: f32[1,256], index: 2, kind: input, shape index: {}]   ;;  %s1800_s3 = inlined_call_operand.vmem [shape: bf16[576,256], index: 3, kind: output, shape index: {}]  }
   0x1   :  { %v1132_v0 = vld [vmem:[%s1797_s1 + $0x70] sm:$0xf]  ;;  %v1189_v1 = vld [vmem:[%s1797_s1 + $0x74] sm:$0xf0]  ;;  %v1188_v2 = vld [vmem:[%s1797_s1 + $0x74] sm:$0xf] }
   0x2   :  { %v1133_v3 = vor.u32 %v1189_v1, %v1132_v0  ;;  %v1134_v4 = vld [vmem:[%s1797_s1 + $0x78] sm:$0xf0]  ;;  %v1124_v5 = vld [vmem:[%s1797_s1 + $0x60] sm:$0xf]  ;;  %v1187_v6 = vld [vmem:[%s1797_s1 + $0x64] sm:$0xf0] }
   0x3   :  { %v1137_v7 = vor.u32 %v1188_v2, %v1134_v4  ;;  %v1186_v8 = vld [vmem:[%s1797_s1 + $0x64] sm:$0xf]  ;;  %v1126_v9 = vld [vmem:[%s1797_s1 + $0x68] sm:$0xf0]  ;;  %v1125_v10 = vor.u32 %v1187_v6, %v1124_v5  ;;  %v1116_v12 = vld [vmem:[%s1797_s1 + $0x50] sm:$0xf] }
   0x4   :  { %404 = vmatpush.bf16.msra.mxu0 %v1133_v3  ;;  %1190 = vmatpush.bf16.msra.mxu2 %v1133_v3  ;;  %v1129_v11 = vor.u32 %v1186_v8, %v1126_v9  ;;  %v1185_v13 = vld [vmem:[%s1797_s1 + $0x54] sm:$0xf0]  ;;  %v1184_v14 = vld [vmem:[%s1797_s1 + $0x54] sm:$0xf]  ;;  %v1118_v15 = vld [vmem:[%s1797_s1 + $0x58] sm:$0xf0] }
   0x5   :  { %593 = vmatpush.bf16.msra.mxu1 %v1137_v7  ;;  %1198 = vmatpush.bf16.msra.mxu3 %v1137_v7  ;;  %v1117_v16 = vor.u32 %v1185_v13, %v1116_v12  ;;  %v1121_v17 = vor.u32 %v1184_v14, %v1118_v15  ;;  %v1108_v18 = vld [vmem:[%s1797_s1 + $0x40] sm:$0xf]  ;;  %v1183_v19 = vld [vmem:[%s1797_s1 + $0x44] sm:$0xf0]  ;;  %v1182_v20 = vld [vmem:[%s1797_s1 + $0x44] sm:$0xf] }
   0x6   :  { %v1110_v21 = vld [vmem:[%s1797_s1 + $0x48] sm:$0xf0]  ;;  %v1109_v22 = vor.u32 %v1183_v19, %v1108_v18  ;;  %v1100_v24 = vld [vmem:[%s1797_s1 + $0x30] sm:$0xf]  ;;  %v1181_v25 = vld [vmem:[%s1797_s1 + $0x34] sm:$0xf0] }
   0x7   :  { %v1113_v23 = vor.u32 %v1182_v20, %v1110_v21  ;;  %v1180_v26 = vld [vmem:[%s1797_s1 + $0x34] sm:$0xf]  ;;  %v1102_v27 = vld [vmem:[%s1797_s1 + $0x38] sm:$0xf0]  ;;  %v1101_v28 = vor.u32 %v1181_v25, %v1100_v24  ;;  %v1092_v30 = vld [vmem:[%s1797_s1 + $0x20] sm:$0xf] }
   0x8   :  { %405 = vmatpush.bf16.msra.mxu0 %v1125_v10  ;;  %1191 = vmatpush.bf16.msra.mxu2 %v1125_v10  ;;  %v1105_v29 = vor.u32 %v1180_v26, %v1102_v27  ;;  %v1179_v31 = vld [vmem:[%s1797_s1 + $0x24] sm:$0xf0]  ;;  %v1178_v32 = vld [vmem:[%s1797_s1 + $0x24] sm:$0xf]  ;;  %v1094_v33 = vld [vmem:[%s1797_s1 + $0x28] sm:$0xf0] }
   0x9   :  { %594 = vmatpush.bf16.msra.mxu1 %v1129_v11  ;;  %1199 = vmatpush.bf16.msra.mxu3 %v1129_v11  ;;  %v1093_v34 = vor.u32 %v1179_v31, %v1092_v30  ;;  %v1097_v35 = vor.u32 %v1178_v32, %v1094_v33  ;;  %v1084_v36 = vld [vmem:[%s1797_s1 + $0x10] sm:$0xf]  ;;  %v1177_v37 = vld [vmem:[%s1797_s1 + $0x14] sm:$0xf0]  ;;  %v1176_v38 = vld [vmem:[%s1797_s1 + $0x14] sm:$0xf] }
   0xa   :  { %v1086_v39 = vld [vmem:[%s1797_s1 + $0x18] sm:$0xf0]  ;;  %v1085_v40 = vor.u32 %v1177_v37, %v1084_v36  ;;  %v1076_v42 = vld [vmem:[%s1797_s1] sm:$0xf]  ;;  %v1175_v43 = vld [vmem:[%s1797_s1 + $0x4] sm:$0xf0] }
   0xb   :  { %v1089_v41 = vor.u32 %v1176_v38, %v1086_v39  ;;  %v1174_v44 = vld [vmem:[%s1797_s1 + $0x4] sm:$0xf]  ;;  %v1078_v45 = vld [vmem:[%s1797_s1 + $0x8] sm:$0xf0]  ;;  %v1077_v46 = vor.u32 %v1175_v43, %v1076_v42  ;;  %v1156_v49 = vld [vmem:[%s1798_s0 + $0x90] sm:$0xff] }
   0xc   :  { %406 = vmatpush.bf16.msra.mxu0 %v1117_v16  ;;  %1192 = vmatpush.bf16.msra.mxu2 %v1117_v16  ;;  %v1081_v47 = vor.u32 %v1174_v44, %v1078_v45  ;;  %v1138_v48 = vld [vmem:[%s1798_s0] sm:$0xff]  ;;  %v1139_v50 = vld [vmem:[%s1798_s0 + $0x8] sm:$0xff]  ;;  %v1157_v51 = vld [vmem:[%s1798_s0 + $0x98] sm:$0xff] }
   0xd   :  { %595 = vmatpush.bf16.msra.mxu1 %v1121_v17  ;;  %1200 = vmatpush.bf16.msra.mxu3 %v1121_v17  ;;  %v1140_v52 = vld [vmem:[%s1798_s0 + $0x10] sm:$0xff]  ;;  %v1158_v53 = vld [vmem:[%s1798_s0 + $0xa0] sm:$0xff]  ;;  %v1141_v54 = vld [vmem:[%s1798_s0 + $0x18] sm:$0xff] }
   0xe   :  { %v1159_v55 = vld [vmem:[%s1798_s0 + $0xa8] sm:$0xff]  ;;  %v1142_v56 = vld [vmem:[%s1798_s0 + $0x20] sm:$0xff]  ;;  %v1160_v57 = vld [vmem:[%s1798_s0 + $0xb0] sm:$0xff] }
   0xf   :  { %v1143_v58 = vld [vmem:[%s1798_s0 + $0x28] sm:$0xff]  ;;  %v1161_v59 = vld [vmem:[%s1798_s0 + $0xb8] sm:$0xff]  ;;  %v1144_v60 = vld [vmem:[%s1798_s0 + $0x30] sm:$0xff] }
  0x10   :  { %407 = vmatpush.bf16.msra.mxu0 %v1109_v22  ;;  %1193 = vmatpush.bf16.msra.mxu2 %v1109_v22  ;;  %v1162_v61 = vld [vmem:[%s1798_s0 + $0xc0] sm:$0xff]  ;;  %v1145_v62 = vld [vmem:[%s1798_s0 + $0x38] sm:$0xff]  ;;  %v1163_v63 = vld [vmem:[%s1798_s0 + $0xc8] sm:$0xff] }
  0x11   :  { %596 = vmatpush.bf16.msra.mxu1 %v1113_v23  ;;  %1201 = vmatpush.bf16.msra.mxu3 %v1113_v23  ;;  %v102_v0 = vld [vmem:[%s1799_s2] sm:$0x3]  ;;  %v1164_v4 = vld [vmem:[%s1798_s0 + $0xd0] sm:$0xff]  ;;  %v1147_v23 = vld [vmem:[%s1798_s0 + $0x48] sm:$0xff] }
  0x12   :  { %v1373_v1 = vperm.slane %v102_v0, 0  ;;  %v1375_v2 = vperm.slane %v102_v0, 1  ;;  %v1146_v3 = vld [vmem:[%s1798_s0 + $0x40] sm:$0xff]  ;;  %v1165_v24 = vld [vmem:[%s1798_s0 + $0xd8] sm:$0xff]  ;;  %v1148_v45 = vld [vmem:[%s1798_s0 + $0x50] sm:$0xff] }
  0x14   :  { %408 = vmatpush.bf16.msra.mxu0 %v1101_v28  ;;  %1194 = vmatpush.bf16.msra.mxu2 %v1101_v28 }
  0x15   :  { %597 = vmatpush.bf16.msra.mxu1 %v1105_v29  ;;  %1202 = vmatpush.bf16.msra.mxu3 %v1105_v29 }
  0x18   :  { %409 = vmatpush.bf16.msra.mxu0 %v1093_v34  ;;  %1195 = vmatpush.bf16.msra.mxu2 %v1093_v34 }
  0x19   :  { %598 = vmatpush.bf16.msra.mxu1 %v1097_v35  ;;  %1203 = vmatpush.bf16.msra.mxu3 %v1097_v35 }
  0x1c   :  { %410 = vmatpush.bf16.msra.mxu0 %v1085_v40  ;;  %1196 = vmatpush.bf16.msra.mxu2 %v1085_v40 }
  0x1d   :  { %599 = vmatpush.bf16.msra.mxu1 %v1089_v41  ;;  %1204 = vmatpush.bf16.msra.mxu3 %v1089_v41 }
  0x20   :  { %411 = vmatpush.bf16.msra.mxu0 %v1077_v46  ;;  %1197 = vmatpush.bf16.msra.mxu2 %v1077_v46  ;;  %v1166_v46 = vld [vmem:[%s1798_s0 + $0xe0] sm:$0xff] }
  0x21   :  { %600 = vmatpush.bf16.msra.mxu1 %v1081_v47  ;;  %1205 = vmatpush.bf16.msra.mxu3 %v1081_v47 }
  0x23   :  { %412 = vmatmul.bf16.vlgmr.msra.gmra.mxu0 %v1138_v48  ;;  %502 = vmatmul.bf16.vlgmr.msra.gmra.mxu2 %v1156_v49 }
  0x24   :  { %601 = vmatmul.bf16.vlgmr.msra.gmra.mxu1 %v1138_v48  ;;  %691 = vmatmul.bf16.vlgmr.msra.gmra.mxu3 %v1156_v49 }
  0x33   :  { %417 = vmatmul.bf16.gmra.mxu0 %v1139_v50  ;;  %507 = vmatmul.bf16.gmra.mxu2 %v1157_v51 }
  0x34   :  { %606 = vmatmul.bf16.gmra.mxu1 %v1139_v50  ;;  %696 = vmatmul.bf16.gmra.mxu3 %v1157_v51 }
  0x43   :  { %422 = vmatmul.bf16.gmra.mxu0 %v1140_v52  ;;  %512 = vmatmul.bf16.gmra.mxu2 %v1158_v53 }
  0x44   :  { %611 = vmatmul.bf16.gmra.mxu1 %v1140_v52  ;;  %701 = vmatmul.bf16.gmra.mxu3 %v1158_v53 }
  0x53   :  { %427 = vmatmul.bf16.gmra.mxu0 %v1141_v54  ;;  %517 = vmatmul.bf16.gmra.mxu2 %v1159_v55 }
  0x54   :  { %616 = vmatmul.bf16.gmra.mxu1 %v1141_v54  ;;  %706 = vmatmul.bf16.gmra.mxu3 %v1159_v55 }
  0x63   :  { %432 = vmatmul.bf16.gmra.mxu0 %v1142_v56  ;;  %522 = vmatmul.bf16.gmra.mxu2 %v1160_v57 }
  0x64   :  { %621 = vmatmul.bf16.gmra.mxu1 %v1142_v56  ;;  %711 = vmatmul.bf16.gmra.mxu3 %v1160_v57 }
  0x73   :  { %437 = vmatmul.bf16.gmra.mxu0 %v1143_v58  ;;  %527 = vmatmul.bf16.gmra.mxu2 %v1161_v59 }
  0x74   :  { %626 = vmatmul.bf16.gmra.mxu1 %v1143_v58  ;;  %716 = vmatmul.bf16.gmra.mxu3 %v1161_v59 }
  0x83   :  { %442 = vmatmul.bf16.gmra.mxu0 %v1144_v60  ;;  %532 = vmatmul.bf16.gmra.mxu2 %v1162_v61 }
  0x84   :  { %631 = vmatmul.bf16.gmra.mxu1 %v1144_v60  ;;  %721 = vmatmul.bf16.gmra.mxu3 %v1162_v61 }
  0x93   :  { %447 = vmatmul.bf16.gmra.mxu0 %v1145_v62  ;;  %537 = vmatmul.bf16.gmra.mxu2 %v1163_v63 }
  0x94   :  { %636 = vmatmul.bf16.gmra.mxu1 %v1145_v62  ;;  %726 = vmatmul.bf16.gmra.mxu3 %v1163_v63 }
  0xa0   :  { %v413_v5 = vpop.f32.mrf.mxu0 }
  0xa1   :  { %v414_v6 = vadd.f32 %v413_v5, %v1373_v1  ;;  %v602_v7 = vpop.f32.mrf.mxu1  ;;  %v1149_v5 = vld [vmem:[%s1798_s0 + $0x58] sm:$0xff] }
  0xa2   :  { %v603_v8 = vadd.f32 %v602_v7, %v1375_v2 }
  0xa3   :  { %452 = vmatmul.bf16.gmra.mxu0 %v1146_v3  ;;  %542 = vmatmul.bf16.gmra.mxu2 %v1164_v4 }
  0xa4   :  { %v782_v9 = vpack.c.bf16 %v603_v8, %v414_v6  ;;  %641 = vmatmul.bf16.gmra.mxu1 %v1146_v3  ;;  %731 = vmatmul.bf16.gmra.mxu3 %v1164_v4  ;;  %v1167_v6 = vld [vmem:[%s1798_s0 + $0xe8] sm:$0xff] }
  0xa6   :  { %854 = vst [vmem:[%s1800_s3] sm:$0xff] %v782_v9  ;;  %v503_v10 = vpop.f32.mrf.mxu2 }
  0xa7   :  { %v504_v11 = vadd.f32 %v503_v10, %v1373_v1  ;;  %v692_v12 = vpop.f32.mrf.mxu3 }
  0xa8   :  { %v693_v13 = vadd.f32 %v692_v12, %v1375_v2  ;;  %v415_v14 = vpop.f32.mrf.mxu0 }
  0xa9   :  { %v416_v15 = vadd.f32 %v415_v14, %v1373_v1  ;;  %v604_v16 = vpop.f32.mrf.mxu1 }
  0xaa   :  { %v818_v17 = vpack.c.bf16 %v693_v13, %v504_v11  ;;  %v605_v18 = vadd.f32 %v604_v16, %v1375_v2 }
  0xac   :  { %890 = vst [vmem:[%s1800_s3 + $0x120] sm:$0xff] %v818_v17  ;;  %v783_v19 = vpack.c.bf16 %v605_v18, %v416_v15 }
  0xae   :  { %855 = vst [vmem:[%s1800_s3 + $0x8] sm:$0xff] %v783_v19  ;;  %v505_v20 = vpop.f32.mrf.mxu2 }
  0xaf   :  { %v506_v21 = vadd.f32 %v505_v20, %v1373_v1  ;;  %v694_v22 = vpop.f32.mrf.mxu3 }
  0xb0   :  { %v695_v25 = vadd.f32 %v694_v22, %v1375_v2  ;;  %v418_v26 = vpop.f32.mrf.mxu0 }
  0xb1   :  { %v419_v27 = vadd.f32 %v418_v26, %v1373_v1  ;;  %v607_v28 = vpop.f32.mrf.mxu1 }
  0xb2   :  { %v819_v29 = vpack.c.bf16 %v695_v25, %v506_v21  ;;  %v608_v30 = vadd.f32 %v607_v28, %v1375_v2  ;;  %v1168_v28 = vld [vmem:[%s1798_s0 + $0xf0] sm:$0xff] }
  0xb3   :  { %457 = vmatmul.bf16.gmra.mxu0 %v1147_v23  ;;  %547 = vmatmul.bf16.gmra.mxu2 %v1165_v24 }
  0xb4   :  { %891 = vst [vmem:[%s1800_s3 + $0x128] sm:$0xff] %v819_v29  ;;  %v784_v31 = vpack.c.bf16 %v608_v30, %v419_v27  ;;  %646 = vmatmul.bf16.gmra.mxu1 %v1147_v23  ;;  %736 = vmatmul.bf16.gmra.mxu3 %v1165_v24  ;;  %v1150_v27 = vld [vmem:[%s1798_s0 + $0x60] sm:$0xff] }
  0xb6   :  { %856 = vst [vmem:[%s1800_s3 + $0x10] sm:$0xff] %v784_v31  ;;  %v508_v32 = vpop.f32.mrf.mxu2 }
  0xb7   :  { %v509_v33 = vadd.f32 %v508_v32, %v1373_v1  ;;  %v697_v34 = vpop.f32.mrf.mxu3 }
  0xb8   :  { %v698_v35 = vadd.f32 %v697_v34, %v1375_v2  ;;  %v420_v36 = vpop.f32.mrf.mxu0 }
  0xb9   :  { %v421_v37 = vadd.f32 %v420_v36, %v1373_v1  ;;  %v609_v38 = vpop.f32.mrf.mxu1 }
  0xba   :  { %v820_v39 = vpack.c.bf16 %v698_v35, %v509_v33  ;;  %v610_v40 = vadd.f32 %v609_v38, %v1375_v2 }
  0xbc   :  { %892 = vst [vmem:[%s1800_s3 + $0x130] sm:$0xff] %v820_v39  ;;  %v785_v41 = vpack.c.bf16 %v610_v40, %v421_v37 }
  0xbe   :  { %857 = vst [vmem:[%s1800_s3 + $0x18] sm:$0xff] %v785_v41  ;;  %v510_v42 = vpop.f32.mrf.mxu2 }
  0xbf   :  { %v511_v43 = vadd.f32 %v510_v42, %v1373_v1  ;;  %v699_v44 = vpop.f32.mrf.mxu3 }
  0xc0   :  { %v700_v47 = vadd.f32 %v699_v44, %v1375_v2  ;;  %v423_v48 = vpop.f32.mrf.mxu0 }
  0xc1   :  { %v424_v49 = vadd.f32 %v423_v48, %v1373_v1  ;;  %v612_v50 = vpop.f32.mrf.mxu1 }
  0xc2   :  { %v821_v51 = vpack.c.bf16 %v700_v47, %v511_v43  ;;  %v613_v52 = vadd.f32 %v612_v50, %v1375_v2  ;;  %v1169_v50 = vld [vmem:[%s1798_s0 + $0xf8] sm:$0xff] }
  0xc3   :  { %462 = vmatmul.bf16.gmra.mxu0 %v1148_v45  ;;  %552 = vmatmul.bf16.gmra.mxu2 %v1166_v46 }
  0xc4   :  { %893 = vst [vmem:[%s1800_s3 + $0x138] sm:$0xff] %v821_v51  ;;  %v786_v53 = vpack.c.bf16 %v613_v52, %v424_v49  ;;  %651 = vmatmul.bf16.gmra.mxu1 %v1148_v45  ;;  %741 = vmatmul.bf16.gmra.mxu3 %v1166_v46  ;;  %v1151_v49 = vld [vmem:[%s1798_s0 + $0x68] sm:$0xff] }
  0xc6   :  { %858 = vst [vmem:[%s1800_s3 + $0x20] sm:$0xff] %v786_v53  ;;  %v513_v54 = vpop.f32.mrf.mxu2 }
  0xc7   :  { %v514_v55 = vadd.f32 %v513_v54, %v1373_v1  ;;  %v702_v56 = vpop.f32.mrf.mxu3 }
  0xc8   :  { %v703_v57 = vadd.f32 %v702_v56, %v1375_v2  ;;  %v425_v58 = vpop.f32.mrf.mxu0 }
  0xc9   :  { %v426_v59 = vadd.f32 %v425_v58, %v1373_v1  ;;  %v614_v60 = vpop.f32.mrf.mxu1 }
  0xca   :  { %v822_v61 = vpack.c.bf16 %v703_v57, %v514_v55  ;;  %v615_v62 = vadd.f32 %v614_v60, %v1375_v2 }
  0xcc   :  { %894 = vst [vmem:[%s1800_s3 + $0x140] sm:$0xff] %v822_v61  ;;  %v787_v63 = vpack.c.bf16 %v615_v62, %v426_v59 }
  0xce   :  { %859 = vst [vmem:[%s1800_s3 + $0x28] sm:$0xff] %v787_v63  ;;  %v515_v0 = vpop.f32.mrf.mxu2 }
  0xcf   :  { %v516_v3 = vadd.f32 %v515_v0, %v1373_v1  ;;  %v704_v4 = vpop.f32.mrf.mxu3 }
  0xd0   :  { %v705_v7 = vadd.f32 %v704_v4, %v1375_v2  ;;  %v428_v8 = vpop.f32.mrf.mxu0 }
  0xd1   :  { %v429_v9 = vadd.f32 %v428_v8, %v1373_v1  ;;  %v617_v10 = vpop.f32.mrf.mxu1 }
  0xd2   :  { %v823_v11 = vpack.c.bf16 %v705_v7, %v516_v3  ;;  %v618_v12 = vadd.f32 %v617_v10, %v1375_v2  ;;  %v1170_v10 = vld [vmem:[%s1798_s0 + $0x100] sm:$0xff] }
  0xd3   :  { %467 = vmatmul.bf16.gmra.mxu0 %v1149_v5  ;;  %557 = vmatmul.bf16.gmra.mxu2 %v1167_v6 }
  0xd4   :  { %895 = vst [vmem:[%s1800_s3 + $0x148] sm:$0xff] %v823_v11  ;;  %v788_v13 = vpack.c.bf16 %v618_v12, %v429_v9  ;;  %656 = vmatmul.bf16.gmra.mxu1 %v1149_v5  ;;  %746 = vmatmul.bf16.gmra.mxu3 %v1167_v6  ;;  %v1152_v9 = vld [vmem:[%s1798_s0 + $0x70] sm:$0xff] }
  0xd6   :  { %860 = vst [vmem:[%s1800_s3 + $0x30] sm:$0xff] %v788_v13  ;;  %v518_v14 = vpop.f32.mrf.mxu2 }
  0xd7   :  { %v519_v15 = vadd.f32 %v518_v14, %v1373_v1  ;;  %v707_v16 = vpop.f32.mrf.mxu3 }
  0xd8   :  { %v708_v17 = vadd.f32 %v707_v16, %v1375_v2  ;;  %v430_v18 = vpop.f32.mrf.mxu0 }
  0xd9   :  { %v431_v19 = vadd.f32 %v430_v18, %v1373_v1  ;;  %v619_v20 = vpop.f32.mrf.mxu1 }
  0xda   :  { %v824_v21 = vpack.c.bf16 %v708_v17, %v519_v15  ;;  %v620_v22 = vadd.f32 %v619_v20, %v1375_v2 }
  0xdc   :  { %896 = vst [vmem:[%s1800_s3 + $0x150] sm:$0xff] %v824_v21  ;;  %v789_v23 = vpack.c.bf16 %v620_v22, %v431_v19 }
  0xde   :  { %861 = vst [vmem:[%s1800_s3 + $0x38] sm:$0xff] %v789_v23  ;;  %v520_v24 = vpop.f32.mrf.mxu2 }
  0xdf   :  { %v521_v25 = vadd.f32 %v520_v24, %v1373_v1  ;;  %v709_v26 = vpop.f32.mrf.mxu3 }
  0xe0   :  { %v710_v29 = vadd.f32 %v709_v26, %v1375_v2  ;;  %v433_v30 = vpop.f32.mrf.mxu0 }
  0xe1   :  { %v434_v31 = vadd.f32 %v433_v30, %v1373_v1  ;;  %v622_v32 = vpop.f32.mrf.mxu1 }
  0xe2   :  { %v825_v33 = vpack.c.bf16 %v710_v29, %v521_v25  ;;  %v623_v34 = vadd.f32 %v622_v32, %v1375_v2  ;;  %v1171_v32 = vld [vmem:[%s1798_s0 + $0x108] sm:$0xff] }
  0xe3   :  { %472 = vmatmul.bf16.gmra.mxu0 %v1150_v27  ;;  %562 = vmatmul.bf16.gmra.mxu2 %v1168_v28 }
  0xe4   :  { %897 = vst [vmem:[%s1800_s3 + $0x158] sm:$0xff] %v825_v33  ;;  %v790_v35 = vpack.c.bf16 %v623_v34, %v434_v31  ;;  %661 = vmatmul.bf16.gmra.mxu1 %v1150_v27  ;;  %751 = vmatmul.bf16.gmra.mxu3 %v1168_v28  ;;  %v1153_v31 = vld [vmem:[%s1798_s0 + $0x78] sm:$0xff] }
  0xe6   :  { %862 = vst [vmem:[%s1800_s3 + $0x40] sm:$0xff] %v790_v35  ;;  %v523_v36 = vpop.f32.mrf.mxu2 }
  0xe7   :  { %v524_v37 = vadd.f32 %v523_v36, %v1373_v1  ;;  %v712_v38 = vpop.f32.mrf.mxu3 }
  0xe8   :  { %v713_v39 = vadd.f32 %v712_v38, %v1375_v2  ;;  %v435_v40 = vpop.f32.mrf.mxu0 }
  0xe9   :  { %v436_v41 = vadd.f32 %v435_v40, %v1373_v1  ;;  %v624_v42 = vpop.f32.mrf.mxu1 }
  0xea   :  { %v826_v43 = vpack.c.bf16 %v713_v39, %v524_v37  ;;  %v625_v44 = vadd.f32 %v624_v42, %v1375_v2 }
  0xec   :  { %898 = vst [vmem:[%s1800_s3 + $0x160] sm:$0xff] %v826_v43  ;;  %v791_v45 = vpack.c.bf16 %v625_v44, %v436_v41 }
  0xee   :  { %863 = vst [vmem:[%s1800_s3 + $0x48] sm:$0xff] %v791_v45  ;;  %v525_v46 = vpop.f32.mrf.mxu2 }
  0xef   :  { %v526_v47 = vadd.f32 %v525_v46, %v1373_v1  ;;  %v714_v48 = vpop.f32.mrf.mxu3 }
  0xf0   :  { %v715_v51 = vadd.f32 %v714_v48, %v1375_v2  ;;  %v438_v52 = vpop.f32.mrf.mxu0 }
  0xf1   :  { %v439_v53 = vadd.f32 %v438_v52, %v1373_v1  ;;  %v627_v54 = vpop.f32.mrf.mxu1 }
  0xf2   :  { %v827_v55 = vpack.c.bf16 %v715_v51, %v526_v47  ;;  %v628_v56 = vadd.f32 %v627_v54, %v1375_v2  ;;  %v1172_v54 = vld [vmem:[%s1798_s0 + $0x110] sm:$0xff] }
  0xf3   :  { %477 = vmatmul.bf16.gmra.mxu0 %v1151_v49  ;;  %567 = vmatmul.bf16.gmra.mxu2 %v1169_v50 }
  0xf4   :  { %899 = vst [vmem:[%s1800_s3 + $0x168] sm:$0xff] %v827_v55  ;;  %v792_v57 = vpack.c.bf16 %v628_v56, %v439_v53  ;;  %666 = vmatmul.bf16.gmra.mxu1 %v1151_v49  ;;  %756 = vmatmul.bf16.gmra.mxu3 %v1169_v50  ;;  %v1154_v53 = vld [vmem:[%s1798_s0 + $0x80] sm:$0xff] }
  0xf6   :  { %864 = vst [vmem:[%s1800_s3 + $0x50] sm:$0xff] %v792_v57  ;;  %v528_v58 = vpop.f32.mrf.mxu2 }
  0xf7   :  { %v529_v59 = vadd.f32 %v528_v58, %v1373_v1  ;;  %v717_v60 = vpop.f32.mrf.mxu3 }
  0xf8   :  { %v718_v61 = vadd.f32 %v717_v60, %v1375_v2  ;;  %v440_v62 = vpop.f32.mrf.mxu0 }
  0xf9   :  { %v441_v63 = vadd.f32 %v440_v62, %v1373_v1  ;;  %v629_v0 = vpop.f32.mrf.mxu1 }
  0xfa   :  { %v828_v3 = vpack.c.bf16 %v718_v61, %v529_v59  ;;  %v630_v4 = vadd.f32 %v629_v0, %v1375_v2 }
  0xfc   :  { %900 = vst [vmem:[%s1800_s3 + $0x170] sm:$0xff] %v828_v3  ;;  %v793_v5 = vpack.c.bf16 %v630_v4, %v441_v63 }
  0xfe   :  { %865 = vst [vmem:[%s1800_s3 + $0x58] sm:$0xff] %v793_v5  ;;  %v530_v6 = vpop.f32.mrf.mxu2 }
  0xff   :  { %v531_v7 = vadd.f32 %v530_v6, %v1373_v1  ;;  %v719_v8 = vpop.f32.mrf.mxu3 }
 0x100   :  { %v720_v11 = vadd.f32 %v719_v8, %v1375_v2  ;;  %v443_v12 = vpop.f32.mrf.mxu0 }
 0x101   :  { %v444_v13 = vadd.f32 %v443_v12, %v1373_v1  ;;  %v632_v14 = vpop.f32.mrf.mxu1 }
 0x102   :  { %v829_v15 = vpack.c.bf16 %v720_v11, %v531_v7  ;;  %v633_v16 = vadd.f32 %v632_v14, %v1375_v2  ;;  %v1173_v14 = vld [vmem:[%s1798_s0 + $0x118] sm:$0xff] }
 0x103   :  { %482 = vmatmul.bf16.gmra.mxu0 %v1152_v9  ;;  %572 = vmatmul.bf16.gmra.mxu2 %v1170_v10 }
 0x104   :  { %901 = vst [vmem:[%s1800_s3 + $0x178] sm:$0xff] %v829_v15  ;;  %v794_v17 = vpack.c.bf16 %v633_v16, %v444_v13  ;;  %671 = vmatmul.bf16.gmra.mxu1 %v1152_v9  ;;  %761 = vmatmul.bf16.gmra.mxu3 %v1170_v10  ;;  %v1155_v13 = vld [vmem:[%s1798_s0 + $0x88] sm:$0xff] }
 0x106   :  { %866 = vst [vmem:[%s1800_s3 + $0x60] sm:$0xff] %v794_v17  ;;  %v533_v18 = vpop.f32.mrf.mxu2 }
 0x107   :  { %v534_v19 = vadd.f32 %v533_v18, %v1373_v1  ;;  %v722_v20 = vpop.f32.mrf.mxu3 }
 0x108   :  { %v723_v21 = vadd.f32 %v722_v20, %v1375_v2  ;;  %v445_v22 = vpop.f32.mrf.mxu0 }
 0x109   :  { %v446_v23 = vadd.f32 %v445_v22, %v1373_v1  ;;  %v634_v24 = vpop.f32.mrf.mxu1 }
 0x10a   :  { %v830_v25 = vpack.c.bf16 %v723_v21, %v534_v19  ;;  %v635_v26 = vadd.f32 %v634_v24, %v1375_v2 }
 0x10c   :  { %902 = vst [vmem:[%s1800_s3 + $0x180] sm:$0xff] %v830_v25  ;;  %v795_v27 = vpack.c.bf16 %v635_v26, %v446_v23 }
 0x10e   :  { %867 = vst [vmem:[%s1800_s3 + $0x68] sm:$0xff] %v795_v27  ;;  %v535_v28 = vpop.f32.mrf.mxu2 }
 0x10f   :  { %v536_v29 = vadd.f32 %v535_v28, %v1373_v1  ;;  %v724_v30 = vpop.f32.mrf.mxu3 }
 0x110   :  { %v725_v33 = vadd.f32 %v724_v30, %v1375_v2  ;;  %v448_v34 = vpop.f32.mrf.mxu0 }
 0x111   :  { %v449_v35 = vadd.f32 %v448_v34, %v1373_v1  ;;  %v637_v36 = vpop.f32.mrf.mxu1 }
 0x112   :  { %v831_v37 = vpack.c.bf16 %v725_v33, %v536_v29  ;;  %v638_v38 = vadd.f32 %v637_v36, %v1375_v2 }
 0x113   :  { %487 = vmatmul.bf16.gmra.mxu0 %v1153_v31  ;;  %577 = vmatmul.bf16.gmra.mxu2 %v1171_v32 }
 0x114   :  { %903 = vst [vmem:[%s1800_s3 + $0x188] sm:$0xff] %v831_v37  ;;  %v796_v39 = vpack.c.bf16 %v638_v38, %v449_v35  ;;  %676 = vmatmul.bf16.gmra.mxu1 %v1153_v31  ;;  %766 = vmatmul.bf16.gmra.mxu3 %v1171_v32 }
 0x116   :  { %868 = vst [vmem:[%s1800_s3 + $0x70] sm:$0xff] %v796_v39  ;;  %v538_v40 = vpop.f32.mrf.mxu2 }
 0x117   :  { %v539_v41 = vadd.f32 %v538_v40, %v1373_v1  ;;  %v727_v42 = vpop.f32.mrf.mxu3 }
 0x118   :  { %v728_v43 = vadd.f32 %v727_v42, %v1375_v2  ;;  %v450_v44 = vpop.f32.mrf.mxu0 }
 0x119   :  { %v451_v45 = vadd.f32 %v450_v44, %v1373_v1  ;;  %v639_v46 = vpop.f32.mrf.mxu1 }
 0x11a   :  { %v832_v47 = vpack.c.bf16 %v728_v43, %v539_v41  ;;  %v640_v48 = vadd.f32 %v639_v46, %v1375_v2 }
 0x11c   :  { %904 = vst [vmem:[%s1800_s3 + $0x190] sm:$0xff] %v832_v47  ;;  %v797_v49 = vpack.c.bf16 %v640_v48, %v451_v45 }
 0x11e   :  { %869 = vst [vmem:[%s1800_s3 + $0x78] sm:$0xff] %v797_v49  ;;  %v540_v50 = vpop.f32.mrf.mxu2 }
 0x11f   :  { %v541_v51 = vadd.f32 %v540_v50, %v1373_v1  ;;  %v729_v52 = vpop.f32.mrf.mxu3 }
 0x120   :  { %v730_v55 = vadd.f32 %v729_v52, %v1375_v2  ;;  %v453_v56 = vpop.f32.mrf.mxu0 }
 0x121   :  { %v454_v57 = vadd.f32 %v453_v56, %v1373_v1  ;;  %v642_v58 = vpop.f32.mrf.mxu1 }
 0x122   :  { %v833_v59 = vpack.c.bf16 %v730_v55, %v541_v51  ;;  %v643_v60 = vadd.f32 %v642_v58, %v1375_v2 }
 0x123   :  { %492 = vmatmul.bf16.gmra.mxu0 %v1154_v53  ;;  %582 = vmatmul.bf16.gmra.mxu2 %v1172_v54 }
 0x124   :  { %905 = vst [vmem:[%s1800_s3 + $0x198] sm:$0xff] %v833_v59  ;;  %v798_v61 = vpack.c.bf16 %v643_v60, %v454_v57  ;;  %681 = vmatmul.bf16.gmra.mxu1 %v1154_v53  ;;  %771 = vmatmul.bf16.gmra.mxu3 %v1172_v54 }
 0x126   :  { %870 = vst [vmem:[%s1800_s3 + $0x80] sm:$0xff] %v798_v61  ;;  %v543_v62 = vpop.f32.mrf.mxu2 }
 0x127   :  { %v544_v63 = vadd.f32 %v543_v62, %v1373_v1  ;;  %v732_v0 = vpop.f32.mrf.mxu3 }
 0x128   :  { %v733_v3 = vadd.f32 %v732_v0, %v1375_v2  ;;  %v455_v4 = vpop.f32.mrf.mxu0 }
 0x129   :  { %v456_v5 = vadd.f32 %v455_v4, %v1373_v1  ;;  %v644_v6 = vpop.f32.mrf.mxu1 }
 0x12a   :  { %v834_v7 = vpack.c.bf16 %v733_v3, %v544_v63  ;;  %v645_v8 = vadd.f32 %v644_v6, %v1375_v2 }
 0x12c   :  { %906 = vst [vmem:[%s1800_s3 + $0x1a0] sm:$0xff] %v834_v7  ;;  %v799_v9 = vpack.c.bf16 %v645_v8, %v456_v5 }
 0x12e   :  { %871 = vst [vmem:[%s1800_s3 + $0x88] sm:$0xff] %v799_v9  ;;  %v545_v10 = vpop.f32.mrf.mxu2 }
 0x12f   :  { %v546_v11 = vadd.f32 %v545_v10, %v1373_v1  ;;  %v734_v12 = vpop.f32.mrf.mxu3 }
 0x130   :  { %v735_v15 = vadd.f32 %v734_v12, %v1375_v2  ;;  %v458_v16 = vpop.f32.mrf.mxu0 }
 0x131   :  { %v459_v17 = vadd.f32 %v458_v16, %v1373_v1  ;;  %v647_v18 = vpop.f32.mrf.mxu1 }
 0x132   :  { %v835_v19 = vpack.c.bf16 %v735_v15, %v546_v11  ;;  %v648_v20 = vadd.f32 %v647_v18, %v1375_v2 }
 0x133   :  { %497 = vmatmul.bf16.gmra.mxu0 %v1155_v13  ;;  %587 = vmatmul.bf16.gmra.mxu2 %v1173_v14 }
 0x134   :  { %907 = vst [vmem:[%s1800_s3 + $0x1a8] sm:$0xff] %v835_v19  ;;  %v800_v21 = vpack.c.bf16 %v648_v20, %v459_v17  ;;  %686 = vmatmul.bf16.gmra.mxu1 %v1155_v13  ;;  %776 = vmatmul.bf16.gmra.mxu3 %v1173_v14 }
 0x136   :  { %872 = vst [vmem:[%s1800_s3 + $0x90] sm:$0xff] %v800_v21  ;;  %v548_v22 = vpop.f32.mrf.mxu2 }
 0x137   :  { %v549_v23 = vadd.f32 %v548_v22, %v1373_v1  ;;  %v737_v24 = vpop.f32.mrf.mxu3 }
 0x138   :  { %v738_v25 = vadd.f32 %v737_v24, %v1375_v2  ;;  %v460_v26 = vpop.f32.mrf.mxu0 }
 0x139   :  { %v461_v27 = vadd.f32 %v460_v26, %v1373_v1  ;;  %v649_v28 = vpop.f32.mrf.mxu1 }
 0x13a   :  { %v836_v29 = vpack.c.bf16 %v738_v25, %v549_v23  ;;  %v650_v30 = vadd.f32 %v649_v28, %v1375_v2 }
 0x13c   :  { %908 = vst [vmem:[%s1800_s3 + $0x1b0] sm:$0xff] %v836_v29  ;;  %v801_v31 = vpack.c.bf16 %v650_v30, %v461_v27 }
 0x13e   :  { %873 = vst [vmem:[%s1800_s3 + $0x98] sm:$0xff] %v801_v31  ;;  %v550_v32 = vpop.f32.mrf.mxu2 }
 0x13f   :  { %v551_v33 = vadd.f32 %v550_v32, %v1373_v1  ;;  %v739_v34 = vpop.f32.mrf.mxu3 }
 0x140   :  { %v740_v35 = vadd.f32 %v739_v34, %v1375_v2  ;;  %v463_v36 = vpop.f32.mrf.mxu0 }
 0x141   :  { %v464_v37 = vadd.f32 %v463_v36, %v1373_v1  ;;  %v652_v38 = vpop.f32.mrf.mxu1 }
 0x142   :  { %v837_v39 = vpack.c.bf16 %v740_v35, %v551_v33  ;;  %v653_v40 = vadd.f32 %v652_v38, %v1375_v2 }
 0x144   :  { %909 = vst [vmem:[%s1800_s3 + $0x1b8] sm:$0xff] %v837_v39  ;;  %v802_v41 = vpack.c.bf16 %v653_v40, %v464_v37 }
 0x146   :  { %874 = vst [vmem:[%s1800_s3 + $0xa0] sm:$0xff] %v802_v41  ;;  %v553_v42 = vpop.f32.mrf.mxu2 }
 0x147   :  { %v554_v43 = vadd.f32 %v553_v42, %v1373_v1  ;;  %v742_v44 = vpop.f32.mrf.mxu3 }
 0x148   :  { %v743_v45 = vadd.f32 %v742_v44, %v1375_v2  ;;  %v465_v46 = vpop.f32.mrf.mxu0 }
 0x149   :  { %v466_v47 = vadd.f32 %v465_v46, %v1373_v1  ;;  %v654_v48 = vpop.f32.mrf.mxu1 }
 0x14a   :  { %v838_v49 = vpack.c.bf16 %v743_v45, %v554_v43  ;;  %v655_v50 = vadd.f32 %v654_v48, %v1375_v2 }
 0x14c   :  { %910 = vst [vmem:[%s1800_s3 + $0x1c0] sm:$0xff] %v838_v49  ;;  %v803_v51 = vpack.c.bf16 %v655_v50, %v466_v47 }
 0x14e   :  { %875 = vst [vmem:[%s1800_s3 + $0xa8] sm:$0xff] %v803_v51  ;;  %v555_v52 = vpop.f32.mrf.mxu2 }
 0x14f   :  { %v556_v53 = vadd.f32 %v555_v52, %v1373_v1  ;;  %v744_v54 = vpop.f32.mrf.mxu3 }
 0x150   :  { %v745_v55 = vadd.f32 %v744_v54, %v1375_v2  ;;  %v468_v56 = vpop.f32.mrf.mxu0 }
 0x151   :  { %v469_v57 = vadd.f32 %v468_v56, %v1373_v1  ;;  %v657_v58 = vpop.f32.mrf.mxu1 }
 0x152   :  { %v839_v59 = vpack.c.bf16 %v745_v55, %v556_v53  ;;  %v658_v60 = vadd.f32 %v657_v58, %v1375_v2 }
 0x154   :  { %911 = vst [vmem:[%s1800_s3 + $0x1c8] sm:$0xff] %v839_v59  ;;  %v804_v61 = vpack.c.bf16 %v658_v60, %v469_v57 }
 0x156   :  { %876 = vst [vmem:[%s1800_s3 + $0xb0] sm:$0xff] %v804_v61  ;;  %v558_v62 = vpop.f32.mrf.mxu2 }
 0x157   :  { %v559_v63 = vadd.f32 %v558_v62, %v1373_v1  ;;  %v747_v0 = vpop.f32.mrf.mxu3 }
 0x158   :  { %v748_v3 = vadd.f32 %v747_v0, %v1375_v2  ;;  %v470_v4 = vpop.f32.mrf.mxu0 }
 0x159   :  { %v471_v5 = vadd.f32 %v470_v4, %v1373_v1  ;;  %v659_v6 = vpop.f32.mrf.mxu1 }
 0x15a   :  { %v840_v7 = vpack.c.bf16 %v748_v3, %v559_v63  ;;  %v660_v8 = vadd.f32 %v659_v6, %v1375_v2 }
 0x15c   :  { %912 = vst [vmem:[%s1800_s3 + $0x1d0] sm:$0xff] %v840_v7  ;;  %v805_v9 = vpack.c.bf16 %v660_v8, %v471_v5 }
 0x15e   :  { %877 = vst [vmem:[%s1800_s3 + $0xb8] sm:$0xff] %v805_v9  ;;  %v560_v10 = vpop.f32.mrf.mxu2 }
 0x15f   :  { %v561_v11 = vadd.f32 %v560_v10, %v1373_v1  ;;  %v749_v12 = vpop.f32.mrf.mxu3 }
 0x160   :  { %v750_v13 = vadd.f32 %v749_v12, %v1375_v2  ;;  %v473_v14 = vpop.f32.mrf.mxu0 }
 0x161   :  { %v474_v15 = vadd.f32 %v473_v14, %v1373_v1  ;;  %v662_v16 = vpop.f32.mrf.mxu1 }
 0x162   :  { %v841_v17 = vpack.c.bf16 %v750_v13, %v561_v11  ;;  %v663_v18 = vadd.f32 %v662_v16, %v1375_v2 }
 0x164   :  { %913 = vst [vmem:[%s1800_s3 + $0x1d8] sm:$0xff] %v841_v17  ;;  %v806_v19 = vpack.c.bf16 %v663_v18, %v474_v15 }
 0x166   :  { %878 = vst [vmem:[%s1800_s3 + $0xc0] sm:$0xff] %v806_v19  ;;  %v563_v20 = vpop.f32.mrf.mxu2 }
 0x167   :  { %v564_v21 = vadd.f32 %v563_v20, %v1373_v1  ;;  %v752_v22 = vpop.f32.mrf.mxu3 }
 0x168   :  { %v753_v23 = vadd.f32 %v752_v22, %v1375_v2  ;;  %v475_v24 = vpop.f32.mrf.mxu0 }
 0x169   :  { %v476_v25 = vadd.f32 %v475_v24, %v1373_v1  ;;  %v664_v26 = vpop.f32.mrf.mxu1 }
 0x16a   :  { %v842_v27 = vpack.c.bf16 %v753_v23, %v564_v21  ;;  %v665_v28 = vadd.f32 %v664_v26, %v1375_v2 }
 0x16c   :  { %914 = vst [vmem:[%s1800_s3 + $0x1e0] sm:$0xff] %v842_v27  ;;  %v807_v29 = vpack.c.bf16 %v665_v28, %v476_v25 }
 0x16e   :  { %879 = vst [vmem:[%s1800_s3 + $0xc8] sm:$0xff] %v807_v29  ;;  %v565_v30 = vpop.f32.mrf.mxu2 }
 0x16f   :  { %v566_v31 = vadd.f32 %v565_v30, %v1373_v1  ;;  %v754_v32 = vpop.f32.mrf.mxu3 }
 0x170   :  { %v755_v33 = vadd.f32 %v754_v32, %v1375_v2  ;;  %v478_v34 = vpop.f32.mrf.mxu0 }
 0x171   :  { %v479_v35 = vadd.f32 %v478_v34, %v1373_v1  ;;  %v667_v36 = vpop.f32.mrf.mxu1 }
 0x172   :  { %v843_v37 = vpack.c.bf16 %v755_v33, %v566_v31  ;;  %v668_v38 = vadd.f32 %v667_v36, %v1375_v2 }
 0x174   :  { %915 = vst [vmem:[%s1800_s3 + $0x1e8] sm:$0xff] %v843_v37  ;;  %v808_v39 = vpack.c.bf16 %v668_v38, %v479_v35 }
 0x176   :  { %880 = vst [vmem:[%s1800_s3 + $0xd0] sm:$0xff] %v808_v39  ;;  %v568_v40 = vpop.f32.mrf.mxu2 }
 0x177   :  { %v569_v41 = vadd.f32 %v568_v40, %v1373_v1  ;;  %v757_v42 = vpop.f32.mrf.mxu3 }
 0x178   :  { %v758_v43 = vadd.f32 %v757_v42, %v1375_v2  ;;  %v480_v44 = vpop.f32.mrf.mxu0 }
 0x179   :  { %v481_v45 = vadd.f32 %v480_v44, %v1373_v1  ;;  %v669_v46 = vpop.f32.mrf.mxu1 }
 0x17a   :  { %v844_v47 = vpack.c.bf16 %v758_v43, %v569_v41  ;;  %v670_v48 = vadd.f32 %v669_v46, %v1375_v2 }
 0x17c   :  { %916 = vst [vmem:[%s1800_s3 + $0x1f0] sm:$0xff] %v844_v47  ;;  %v809_v49 = vpack.c.bf16 %v670_v48, %v481_v45 }
 0x17e   :  { %881 = vst [vmem:[%s1800_s3 + $0xd8] sm:$0xff] %v809_v49  ;;  %v570_v50 = vpop.f32.mrf.mxu2 }
 0x17f   :  { %v571_v51 = vadd.f32 %v570_v50, %v1373_v1  ;;  %v759_v52 = vpop.f32.mrf.mxu3 }
 0x180   :  { %v760_v53 = vadd.f32 %v759_v52, %v1375_v2  ;;  %v483_v54 = vpop.f32.mrf.mxu0 }
 0x181   :  { %v484_v55 = vadd.f32 %v483_v54, %v1373_v1  ;;  %v672_v56 = vpop.f32.mrf.mxu1 }
 0x182   :  { %v845_v57 = vpack.c.bf16 %v760_v53, %v571_v51  ;;  %v673_v58 = vadd.f32 %v672_v56, %v1375_v2 }
 0x184   :  { %917 = vst [vmem:[%s1800_s3 + $0x1f8] sm:$0xff] %v845_v57  ;;  %v810_v59 = vpack.c.bf16 %v673_v58, %v484_v55 }
 0x186   :  { %882 = vst [vmem:[%s1800_s3 + $0xe0] sm:$0xff] %v810_v59  ;;  %v573_v60 = vpop.f32.mrf.mxu2 }
 0x187   :  { %v574_v61 = vadd.f32 %v573_v60, %v1373_v1  ;;  %v762_v62 = vpop.f32.mrf.mxu3 }
 0x188   :  { %v763_v63 = vadd.f32 %v762_v62, %v1375_v2  ;;  %v485_v0 = vpop.f32.mrf.mxu0 }
 0x189   :  { %v486_v3 = vadd.f32 %v485_v0, %v1373_v1  ;;  %v674_v4 = vpop.f32.mrf.mxu1 }
 0x18a   :  { %v846_v5 = vpack.c.bf16 %v763_v63, %v574_v61  ;;  %v675_v6 = vadd.f32 %v674_v4, %v1375_v2 }
 0x18c   :  { %918 = vst [vmem:[%s1800_s3 + $0x200] sm:$0xff] %v846_v5  ;;  %v811_v7 = vpack.c.bf16 %v675_v6, %v486_v3 }
 0x18e   :  { %883 = vst [vmem:[%s1800_s3 + $0xe8] sm:$0xff] %v811_v7  ;;  %v575_v8 = vpop.f32.mrf.mxu2 }
 0x18f   :  { %v576_v9 = vadd.f32 %v575_v8, %v1373_v1  ;;  %v764_v10 = vpop.f32.mrf.mxu3 }
 0x190   :  { %v765_v11 = vadd.f32 %v764_v10, %v1375_v2  ;;  %v488_v12 = vpop.f32.mrf.mxu0 }
 0x191   :  { %v489_v13 = vadd.f32 %v488_v12, %v1373_v1  ;;  %v677_v14 = vpop.f32.mrf.mxu1 }
 0x192   :  { %v847_v15 = vpack.c.bf16 %v765_v11, %v576_v9  ;;  %v678_v16 = vadd.f32 %v677_v14, %v1375_v2 }
 0x194   :  { %919 = vst [vmem:[%s1800_s3 + $0x208] sm:$0xff] %v847_v15  ;;  %v812_v17 = vpack.c.bf16 %v678_v16, %v489_v13 }
 0x196   :  { %884 = vst [vmem:[%s1800_s3 + $0xf0] sm:$0xff] %v812_v17  ;;  %v578_v18 = vpop.f32.mrf.mxu2 }
 0x197   :  { %v579_v19 = vadd.f32 %v578_v18, %v1373_v1  ;;  %v767_v20 = vpop.f32.mrf.mxu3 }
 0x198   :  { %v768_v21 = vadd.f32 %v767_v20, %v1375_v2  ;;  %v490_v22 = vpop.f32.mrf.mxu0 }
 0x199   :  { %v491_v23 = vadd.f32 %v490_v22, %v1373_v1  ;;  %v679_v24 = vpop.f32.mrf.mxu1 }
 0x19a   :  { %v848_v25 = vpack.c.bf16 %v768_v21, %v579_v19  ;;  %v680_v26 = vadd.f32 %v679_v24, %v1375_v2 }
 0x19c   :  { %920 = vst [vmem:[%s1800_s3 + $0x210] sm:$0xff] %v848_v25  ;;  %v813_v27 = vpack.c.bf16 %v680_v26, %v491_v23 }
 0x19e   :  { %885 = vst [vmem:[%s1800_s3 + $0xf8] sm:$0xff] %v813_v27  ;;  %v580_v28 = vpop.f32.mrf.mxu2 }
 0x19f   :  { %v581_v29 = vadd.f32 %v580_v28, %v1373_v1  ;;  %v769_v30 = vpop.f32.mrf.mxu3 }
 0x1a0   :  { %v770_v31 = vadd.f32 %v769_v30, %v1375_v2  ;;  %v493_v32 = vpop.f32.mrf.mxu0 }
 0x1a1   :  { %v494_v33 = vadd.f32 %v493_v32, %v1373_v1  ;;  %v682_v34 = vpop.f32.mrf.mxu1 }
 0x1a2   :  { %v849_v35 = vpack.c.bf16 %v770_v31, %v581_v29  ;;  %v683_v36 = vadd.f32 %v682_v34, %v1375_v2 }
 0x1a4   :  { %921 = vst [vmem:[%s1800_s3 + $0x218] sm:$0xff] %v849_v35  ;;  %v814_v37 = vpack.c.bf16 %v683_v36, %v494_v33 }
 0x1a6   :  { %886 = vst [vmem:[%s1800_s3 + $0x100] sm:$0xff] %v814_v37  ;;  %v583_v38 = vpop.f32.mrf.mxu2 }
 0x1a7   :  { %v584_v39 = vadd.f32 %v583_v38, %v1373_v1  ;;  %v772_v40 = vpop.f32.mrf.mxu3 }
 0x1a8   :  { %v773_v41 = vadd.f32 %v772_v40, %v1375_v2  ;;  %v495_v42 = vpop.f32.mrf.mxu0 }
 0x1a9   :  { %v496_v43 = vadd.f32 %v495_v42, %v1373_v1  ;;  %v684_v44 = vpop.f32.mrf.mxu1 }
 0x1aa   :  { %v850_v45 = vpack.c.bf16 %v773_v41, %v584_v39  ;;  %v685_v46 = vadd.f32 %v684_v44, %v1375_v2 }
 0x1ac   :  { %922 = vst [vmem:[%s1800_s3 + $0x220] sm:$0xff] %v850_v45  ;;  %v815_v47 = vpack.c.bf16 %v685_v46, %v496_v43 }
 0x1ae   :  { %887 = vst [vmem:[%s1800_s3 + $0x108] sm:$0xff] %v815_v47  ;;  %v585_v48 = vpop.f32.mrf.mxu2 }
 0x1af   :  { %v586_v49 = vadd.f32 %v585_v48, %v1373_v1  ;;  %v774_v50 = vpop.f32.mrf.mxu3 }
 0x1b0   :  { %v775_v51 = vadd.f32 %v774_v50, %v1375_v2  ;;  %v498_v52 = vpop.f32.mrf.mxu0 }
 0x1b1   :  { %v499_v53 = vadd.f32 %v498_v52, %v1373_v1  ;;  %v687_v54 = vpop.f32.mrf.mxu1 }
 0x1b2   :  { %v851_v55 = vpack.c.bf16 %v775_v51, %v586_v49  ;;  %v688_v56 = vadd.f32 %v687_v54, %v1375_v2 }
 0x1b4   :  { %923 = vst [vmem:[%s1800_s3 + $0x228] sm:$0xff] %v851_v55  ;;  %v816_v57 = vpack.c.bf16 %v688_v56, %v499_v53 }
 0x1b6   :  { %888 = vst [vmem:[%s1800_s3 + $0x110] sm:$0xff] %v816_v57  ;;  %v588_v58 = vpop.f32.mrf.mxu2 }
 0x1b7   :  { %v589_v59 = vadd.f32 %v588_v58, %v1373_v1  ;;  %v777_v60 = vpop.f32.mrf.mxu3 }
 0x1b8   :  { %v778_v61 = vadd.f32 %v777_v60, %v1375_v2  ;;  %v500_v62 = vpop.f32.mrf.mxu0 }
 0x1b9   :  { %v501_v63 = vadd.f32 %v500_v62, %v1373_v1  ;;  %v689_v0 = vpop.f32.mrf.mxu1 }
 0x1ba   :  { %v852_v3 = vpack.c.bf16 %v778_v61, %v589_v59  ;;  %v690_v4 = vadd.f32 %v689_v0, %v1375_v2 }
 0x1bc   :  { %924 = vst [vmem:[%s1800_s3 + $0x230] sm:$0xff] %v852_v3  ;;  %v817_v5 = vpack.c.bf16 %v690_v4, %v501_v63 }
 0x1be   :  { %889 = vst [vmem:[%s1800_s3 + $0x118] sm:$0xff] %v817_v5  ;;  %v590_v6 = vpop.f32.mrf.mxu2 }
 0x1bf   :  { %v591_v7 = vadd.f32 %v590_v6, %v1373_v1  ;;  %v779_v8 = vpop.f32.mrf.mxu3 }
 0x1c0   :  { %v780_v9 = vadd.f32 %v779_v8, %v1375_v2 }
 0x1c2   :  { %v853_v10 = vpack.c.bf16 %v780_v9, %v591_v7 }
 0x1c4   :  { %925 = vst [vmem:[%s1800_s3 + $0x238] sm:$0xff] %v853_v10 }

</bundles_post_ra>
